<compile_context>
chip_gen: v6e
topology: v6e:2x2x1
jax: 0.10.0
libtpu: 0.0.40
codegen_flags: <defaults>
</compile_context>

<pallas_src>
import functools

import jax
import jax.numpy as jnp
from jax.experimental import pallas as pl
from jax.experimental.pallas import tpu as pltpu


# ---------------------------------------------------------------------------
# Fused MLP kernel: one row-tile per grid step
# ---------------------------------------------------------------------------
def _ffn_kernel(x_ref, w1_ref, b1_ref, w2_ref, b2_ref, o_ref):
    # x_ref : (tm, C)      row tile of flattened activations
    # w1_ref: (C, Fd)      first linear weight (resident across grid steps)
    # b1_ref: (1, Fd)
    # w2_ref: (Fd, C)      second linear weight (resident)
    # b2_ref: (1, C)
    # o_ref : (tm, C)
    x_bf = x_ref[...].astype(jnp.bfloat16)
    w1_bf = w1_ref[...].astype(jnp.bfloat16)

    # Linear1 on the MXU (bf16 in, f32 accumulate), bias + ReLU on the VPU in f32.
    h = jnp.dot(x_bf, w1_bf, preferred_element_type=jnp.float32)   # (tm, Fd)
    h = h + b1_ref[...]                                            # broadcast (1, Fd)
    h = jnp.maximum(h, 0.0)                                        # ReLU in f32

    # Linear2 on the MXU.
    w2_bf = w2_ref[...].astype(jnp.bfloat16)
    y = jnp.dot(h.astype(jnp.bfloat16), w2_bf,
                preferred_element_type=jnp.float32)                # (tm, C)
    y = y + b2_ref[...]                                            # broadcast (1, C)

    # TODO(synk): training-mode nn.Dropout omitted (eval / p = 0 -> identity).
    o_ref[...] = y.astype(o_ref.dtype)


# ---------------------------------------------------------------------------
# Wrapper: flatten (B, T, C) -> (B*T, C), tile rows, call the fused kernel
# ---------------------------------------------------------------------------
def feed_forward(x, params, *, tile_rows=256):
    """Equivalent of FeedFoward.forward (eval mode, dropout = identity).

    x: (B, T, C);  params: w1 (C, Fd), b1 (Fd,), w2 (Fd, C), b2 (C,)
    """
    w1, b1, w2, b2 = params["w1"], params["b1"], params["w2"], params["b2"]
    B, T, C = x.shape
    Fd = w1.shape[1]

    rows = B * T
    x2 = x.reshape(rows, C)

    # Row tiling: biggest tile that fits the problem (per-step overhead amortized),
    # rows padded up to a tile multiple so every grid step is full-size.
    tm = min(tile_rows, rows)
    n_tiles = pl.cdiv(rows, tm)
    padded_rows = n_tiles * tm
    if padded_rows != rows:
        x2 = jnp.pad(x2, ((0, padded_rows - rows), (0, 0)))

    cost = pl.CostEstimate(
        flops=2 * padded_rows * C * Fd + 2 * padded_rows * Fd * C,
        transcendentals=0,
        bytes_accessed=(2 * padded_rows * C * 4          # x in, y out
                        + C * Fd * 4 + Fd * C * 4        # weights
                        + Fd * 4 + C * 4),               # biases
    )

    out = pl.pallas_call(
        _ffn_kernel,
        out_shape=jax.ShapeDtypeStruct((padded_rows, C), jnp.float32),
        grid_spec=pltpu.PrefetchScalarGridSpec(
            num_scalar_prefetch=0,
            grid=(n_tiles,),
            in_specs=[
                pl.BlockSpec((tm, C), lambda i: (i, 0)),   # activations: per-tile
                pl.BlockSpec((C, Fd), lambda i: (0, 0)),   # w1: resident
                pl.BlockSpec((1, Fd), lambda i: (0, 0)),   # b1: resident
                pl.BlockSpec((Fd, C), lambda i: (0, 0)),   # w2: resident
                pl.BlockSpec((1, C), lambda i: (0, 0)),    # b2: resident
            ],
            out_specs=pl.BlockSpec((tm, C), lambda i: (i, 0)),
        ),
        compiler_params=pltpu.CompilerParams(
            dimension_semantics=("parallel",),             # shard row tiles across TCs
            vmem_limit_bytes=64 * 1024 * 1024,             # v7x-safe budget
        ),
        cost_estimate=cost,
    )(x2, w1, b1.reshape(1, Fd), w2, b2.reshape(1, C))

    return out[:rows].reshape(B, T, C)


# ---------------------------------------------------------------------------
# Reference (plain JAX, f32) for sanity check
# ---------------------------------------------------------------------------
def _reference(x, params):
    h = jnp.maximum(x @ params["w1"] + params["b1"], 0.0)
    return h @ params["w2"] + params["b2"]


if __name__ == "__main__":
    # Small shapes consistent with the module: n_embd = 32, ffn_intermediate = 4*n_embd.
    B, T, C = 2, 8, 32
    Fd = 4 * C  # 128

    key = jax.random.PRNGKey(0)
    kx, k1, kb1, k2, kb2 = jax.random.split(key, 5)

    x = jax.random.normal(kx, (B, T, C), dtype=jnp.float32)

    # nn.Linear-like init: uniform(-1/sqrt(fan_in), 1/sqrt(fan_in)); weights stored
    # transposed vs torch ((in, out)) so the kernel does x @ W directly.
    def uinit(k, shape, fan_in):
        bound = 1.0 / (fan_in ** 0.5)
        return jax.random.uniform(k, shape, jnp.float32, -bound, bound)

    params = {
        "w1": uinit(k1, (C, Fd), C),
        "b1": uinit(kb1, (Fd,), C),
        "w2": uinit(k2, (Fd, C), Fd),
        "b2": uinit(kb2, (C,), Fd),
    }

    out = feed_forward(x, params)
    out = jax.block_until_ready(out)

    ref = _reference(x, params)
    assert out.shape == (B, T, C)
    # bf16 MXU operands -> loosened tolerance vs the f32 reference.
    assert jnp.allclose(out, ref, rtol=3e-2, atol=3e-2), (
        "mismatch vs reference: max abs diff = %e" % float(jnp.max(jnp.abs(out - ref)))
    )

    print("KERNEL_OK")
</pallas_src>

<mosaic_0001>
module attributes {stable_mosaic.version = 11 : i64} {
  func.func @_ffn_kernel(%arg0: i32, %arg1: memref<16x32xf32, #tpu.memory_space<vmem>>, %arg2: memref<32x128xf32, #tpu.memory_space<vmem>>, %arg3: memref<1x128xf32, #tpu.memory_space<vmem>>, %arg4: memref<128x32xf32, #tpu.memory_space<vmem>>, %arg5: memref<1x32xf32, #tpu.memory_space<vmem>>, %arg6: memref<16x32xf32, #tpu.memory_space<vmem>>) attributes {dimension_semantics = [#tpu.dimension_semantics<parallel>], iteration_bounds = array<i64: 1>, scalar_prefetch = 0 : i64, scratch_operands = 0 : i64, tpu.core_type = #tpu.core_type<tc>, window_params = [{transform_indices = @transform_0, window_bounds = array<i64: 16, 32>}, {pipeline_mode = #tpu.pipeline_mode<synchronous>, transform_indices = @transform_1, window_bounds = array<i64: 32, 128>}, {pipeline_mode = #tpu.pipeline_mode<synchronous>, transform_indices = @transform_2, window_bounds = array<i64: 1, 128>}, {pipeline_mode = #tpu.pipeline_mode<synchronous>, transform_indices = @transform_3, window_bounds = array<i64: 128, 32>}, {pipeline_mode = #tpu.pipeline_mode<synchronous>, transform_indices = @transform_4, window_bounds = array<i64: 1, 32>}, {transform_indices = @transform_5, window_bounds = array<i64: 16, 32>}]} {
    %c0 = arith.constant 0 : index
    %c0_0 = arith.constant 0 : index
    %0 = vector.load %arg1[%c0, %c0_0] : memref<16x32xf32, #tpu.memory_space<vmem>>, vector<16x32xf32>
    %1 = arith.truncf %0 : vector<16x32xf32> to vector<16x32xbf16>
    %c0_1 = arith.constant 0 : index
    %c0_2 = arith.constant 0 : index
    %2 = vector.load %arg2[%c0_1, %c0_2] : memref<32x128xf32, #tpu.memory_space<vmem>>, vector<32x128xf32>
    %3 = arith.truncf %2 : vector<32x128xf32> to vector<32x128xbf16>
    %cst = arith.constant dense<0.000000e+00> : vector<16x128xf32>
    %4 = tpu.matmul %1, %3, %cst {dimension_numbers = #tpu.dot_dimension_numbers<[1], [0], [0], [1], [0, 0, 1, 1], [], []>} : vector<16x32xbf16>, vector<32x128xbf16>, vector<16x128xf32> -> vector<16x128xf32>
    %c0_3 = arith.constant 0 : index
    %c0_4 = arith.constant 0 : index
    %5 = vector.load %arg3[%c0_3, %c0_4] : memref<1x128xf32, #tpu.memory_space<vmem>>, vector<1x128xf32>
    %6 = vector.broadcast %5 : vector<1x128xf32> to vector<16x128xf32>
    %7 = arith.addf %4, %6 : vector<16x128xf32>
    %cst_5 = arith.constant 0.000000e+00 : f32
    %8 = vector.broadcast %cst_5 : f32 to vector<16x128xf32>
    %9 = arith.maximumf %7, %8 : vector<16x128xf32>
    %c0_6 = arith.constant 0 : index
    %c0_7 = arith.constant 0 : index
    %10 = vector.load %arg4[%c0_6, %c0_7] : memref<128x32xf32, #tpu.memory_space<vmem>>, vector<128x32xf32>
    %11 = arith.truncf %10 : vector<128x32xf32> to vector<128x32xbf16>
    %12 = arith.truncf %9 : vector<16x128xf32> to vector<16x128xbf16>
    %cst_8 = arith.constant dense<0.000000e+00> : vector<16x32xf32>
    %13 = tpu.matmul %12, %11, %cst_8 {dimension_numbers = #tpu.dot_dimension_numbers<[1], [0], [0], [1], [0, 0, 1, 1], [], []>} : vector<16x128xbf16>, vector<128x32xbf16>, vector<16x32xf32> -> vector<16x32xf32>
    %c0_9 = arith.constant 0 : index
    %c0_10 = arith.constant 0 : index
    %14 = vector.load %arg5[%c0_9, %c0_10] : memref<1x32xf32, #tpu.memory_space<vmem>>, vector<1x32xf32>
    %15 = vector.broadcast %14 : vector<1x32xf32> to vector<16x32xf32>
    %16 = arith.addf %13, %15 : vector<16x32xf32>
    %c0_11 = arith.constant 0 : index
    %c0_12 = arith.constant 0 : index
    %17 = vector.load %arg6[%c0_11, %c0_12] : memref<16x32xf32, #tpu.memory_space<vmem>>, vector<16x32xf32>
    tpu.vector_store %arg6[%c0_11, %c0_12], %16 {strides = array<i32>} : memref<16x32xf32, #tpu.memory_space<vmem>>, vector<16x32xf32>,
    return
  }
  func.func @transform_0(%arg0: i32) -> (i32, i32) {
    %c0_i32 = arith.constant 0 : i32
    %c0_i32_0 = arith.constant 0 : i32
    return %arg0, %c0_i32 : i32, i32
  }
  func.func @transform_1(%arg0: i32) -> (i32, i32) {
    %c0_i32 = arith.constant 0 : i32
    %c0_i32_0 = arith.constant 0 : i32
    %c0_i32_1 = arith.constant 0 : i32
    return %c0_i32, %c0_i32_0 : i32, i32
  }
  func.func @transform_2(%arg0: i32) -> (i32, i32) {
    %c0_i32 = arith.constant 0 : i32
    %c0_i32_0 = arith.constant 0 : i32
    %c0_i32_1 = arith.constant 0 : i32
    return %c0_i32, %c0_i32_0 : i32, i32
  }
  func.func @transform_3(%arg0: i32) -> (i32, i32) {
    %c0_i32 = arith.constant 0 : i32
    %c0_i32_0 = arith.constant 0 : i32
    %c0_i32_1 = arith.constant 0 : i32
    return %c0_i32, %c0_i32_0 : i32, i32
  }
  func.func @transform_4(%arg0: i32) -> (i32, i32) {
    %c0_i32 = arith.constant 0 : i32
    %c0_i32_0 = arith.constant 0 : i32
    %c0_i32_1 = arith.constant 0 : i32
    return %c0_i32, %c0_i32_0 : i32, i32
  }
  func.func @transform_5(%arg0: i32) -> (i32, i32) {
    %c0_i32 = arith.constant 0 : i32
    %c0_i32_0 = arith.constant 0 : i32
    return %arg0, %c0_i32 : i32, i32
  }
}

</mosaic_0001>

<bundles_post_ra>
// kernel: tpu_custom_call.1
= control target key start
LH: loop header
LB: loop body
LE: loop exit
PB: predicated region body
PF: predicated region fallthrough
CT: control target
= control target key end

     0   :  { %v246_v3 = vmov 0.0   ;;  %vm247_vm0 = vmmov 0   ;;  %s359_s0 = inlined_call_operand.vmem [shape: f32[16,32], index: 0, kind: input, shape index: {}]   ;;  %s360_s1 = inlined_call_operand.vmem [shape: f32[32,128], index: 1, kind: input, shape index: {}]   ;;  %s361_s2 = inlined_call_operand.vmem [shape: f32[1,128], index: 2, kind: input, shape index: {}]   ;;  %s362_s3 = inlined_call_operand.vmem [shape: f32[128,32], index: 3, kind: input, shape index: {}]   ;;  %s363_s4 = inlined_call_operand.vmem [shape: f32[1,32], index: 4, kind: input, shape index: {}]   ;;  %s364_s5 = inlined_call_operand.hbm [shape: f32[16,32], index: 5, kind: output, shape index: {}]  }
   0x1   :  { %v27_v0 = vld [vmem:[%s360_s1 + $0x10] sm:$0xff]  ;;  %v28_v1 = vld [vmem:[%s360_s1 + $0x18] sm:$0xff]  ;;  %v25_v2 = vld [vmem:[%s360_s1] sm:$0xff]  ;;  %191 = vmatprep.subr.bf16.mxu0 %v246_v3  ;;  %195 = vmatprep.mubr.msk.bf16.mxu0 %vm247_vm0, %v246_v3 }
   0x2   :  { %v30_v4 = vpack.c.bf16 %v28_v1, %v27_v0  ;;  %v26_v5 = vld [vmem:[%s360_s1 + $0x8] sm:$0xff]  ;;  %199 = vmatprep.subr.bf16.mxu1 %v246_v3  ;;  %v99_v6 = vld [vmem:[%s362_s3 + $0x70] sm:$0xff]  ;;  %v100_v7 = vld [vmem:[%s362_s3 + $0x78] sm:$0xff]  ;;  %215 = vmatprep.mubr.msk.bf16.mxu1 %vm247_vm0, %v246_v3 }
   0x3   :  { %v97_v8 = vld [vmem:[%s362_s3 + $0x60] sm:$0xff]  ;;  %v29_v9 = vpack.c.bf16 %v26_v5, %v25_v2  ;;  %v23_v11 = vld [vmem:[%s359_s0 + $0x8] sm:$0xff]  ;;  %v108_v12 = vpack.c.bf16 %v100_v7, %v99_v6 }
   0x4   :  { %192 = vmatpush3.bf16.msra.mxu0 %v30_v4  ;;  %v22_v10 = vld [vmem:[%s359_s0] sm:$0xff]  ;;  %v98_v13 = vld [vmem:[%s362_s3 + $0x68] sm:$0xff] }
   0x5   :  { %193 = vmatprep.subr.bf16.mxu0 %v246_v3  ;;  %200 = vmatpush3.bf16.msra.mxu1 %v108_v12  ;;  %v107_v14 = vpack.c.bf16 %v98_v13, %v97_v8 }
   0x6   :  { %10 = vsyncpa [#allocation3], 0  ;;  %v24_v15 = vpack.c.bf16 %v23_v11, %v22_v10  ;;  %201 = vmatprep.subr.bf16.mxu1 %v246_v3  ;;  %v95_v16 = vld [vmem:[%s362_s3 + $0x50] sm:$0xff]  ;;  %v96_v17 = vld [vmem:[%s362_s3 + $0x58] sm:$0xff]  ;;  %vm38_vm1 = vcmask 261120  }
   0x7   :  { %v106_v18 = vpack.c.bf16 %v96_v17, %v95_v16  ;;  %v93_v19 = vld [vmem:[%s362_s3 + $0x40] sm:$0xff]  ;;  %v94_v20 = vld [vmem:[%s362_s3 + $0x48] sm:$0xff]  ;;  %v91_v22 = vld [vmem:[%s362_s3 + $0x30] sm:$0xff] }
   0x8   :  { %194 = vmatpush3.bf16.msra.mxu0 %v29_v9  ;;  %v105_v21 = vpack.c.bf16 %v94_v20, %v93_v19  ;;  %v92_v23 = vld [vmem:[%s362_s3 + $0x38] sm:$0xff]  ;;  %v89_v25 = vld [vmem:[%s362_s3 + $0x20] sm:$0xff]  ;;  %v90_v26 = vld [vmem:[%s362_s3 + $0x28] sm:$0xff] }
   0x9   :  { %202 = vmatpush3.bf16.msra.mxu1 %v107_v14  ;;  %v104_v24 = vpack.c.bf16 %v92_v23, %v91_v22  ;;  %v103_v27 = vpack.c.bf16 %v90_v26, %v89_v25  ;;  %v87_v28 = vld [vmem:[%s362_s3 + $0x10] sm:$0xff]  ;;  %v88_v29 = vld [vmem:[%s362_s3 + $0x18] sm:$0xff]  ;;  %v85_v31 = vld [vmem:[%s362_s3] sm:$0xff] }
   0xa   :  { %203 = vmatprep.subr.bf16.mxu1 %v246_v3  ;;  %v102_v30 = vpack.c.bf16 %v88_v29, %v87_v28  ;;  %v86_v32 = vld [vmem:[%s362_s3 + $0x8] sm:$0xff]  ;;  %v176_v34 = vld [vmem:[%s361_s2] ss:$0 sm:$0xff]  ;;  %s248_s3 = smov [#allocation2]  }
   0xb   :  { %196 = vmatmul.mubr.msk.bf16.vlgmr.msra.gmra.mxu0 %vm38_vm1, %v24_v15  ;;  %v101_v33 = vpack.c.bf16 %v86_v32, %v85_v31  ;;  %v178_v44 = vld [vmem:[%s363_s4] ss:$0 sm:$0xff]  ;;  %s165_s13 = sshll.u32 %s248_s3, 4  ;;  %s166_s13 = int_to_ptr.vmem [resolvable:$true] %s165_s13 }
   0xc   :  { %s224_s2 = scalar_lea.vmem %s166_s13, 256  ;;  %p229_p1 = scmp.lt.s32.totalorder %s166_s13, %s166_s13 }
   0xd   :  { %204 = vmatpush3.bf16.msra.mxu1 %v106_v18  ;;  %p225_p0 = scmp.ne.s32.totalorder %s166_s13, %s224_s2  ;;  %p230_p2 = scmp.lt.s32.totalorder %s224_s2, %s224_s2 }
   0xe   :  { %205 = vmatprep.subr.bf16.mxu1 %v246_v3 }
   0xf   :  { %p231_p3 = por %p230_p2, %p229_p1 }
  0x11   :  { %206 = vmatpush3.bf16.msra.mxu1 %v105_v21  ;;  %p232_p4 = pnand %p231_p3, %p225_p0 }
  0x12   :  { %207 = vmatprep.subr.bf16.mxu1 %v246_v3 }
  0x15   :  { %208 = vmatpush3.bf16.msra.mxu1 %v104_v24 }
  0x16   :  { %209 = vmatprep.subr.bf16.mxu1 %v246_v3 }
  0x19   :  { %210 = vmatpush3.bf16.msra.mxu1 %v103_v27 }
  0x1a   :  { %211 = vmatprep.subr.bf16.mxu1 %v246_v3 }
  0x1d   :  { %212 = vmatpush3.bf16.msra.mxu1 %v102_v30 }
  0x1e   :  { %213 = vmatprep.subr.bf16.mxu1 %v246_v3 }
  0x21   :  { %214 = vmatpush3.bf16.msra.mxu1 %v101_v33 }
  0xcb   :  { %v76_v35 = vpop.f32.mrf.mxu0 }
  0xcc   :  { %v77_v37 = vadd.f32 %v176_v34, %v76_v35 }
  0xcd   :  { %v197_v36 = vpop.f32.mrf.mxu0 }
  0xce   :  { %v83_v41 = vmax.f32 %v77_v37, 0.0 }
  0xcf   :  { %v79_v38 = vpop.f32.mrf.mxu0 }
  0xd0   :  { %v80_v39 = vadd.f32 %v176_v34, %v79_v38 }
  0xd1   :  { %v198_v40 = vpop.f32.mrf.mxu0 }
  0xd2   :  { %v84_v42 = vmax.f32 %v80_v39, 0.0 }
  0xd4   :  { %v109_v43 = vpack.c.bf16 %v84_v42, %v83_v41 }
  0xd6   :  { %216 = vmatmul.mubr.bf16.vlgmr.msra.gmra.mxu1 %v109_v43 }
 0x196   :  { %v151_v45 = vpop.f32.mrf.mxu1 }
 0x197   :  { %v152_v46 = vadd.f32 %v178_v44, %v151_v45 }
 0x198   :  { %v217_v47 = vpop.f32.mrf.mxu1 }
 0x199   :  { %158 = vst.msk [vmem:[#allocation2] sm:$0xff] %vm38_vm1, %v152_v46 }
 0x19a   :  { %v154_v48 = vpop.f32.mrf.mxu1 }
 0x19b   :  { %v155_v49 = vadd.f32 %v178_v44, %v154_v48 }
 0x19c   :  { %v218_v50 = vpop.f32.mrf.mxu1 }
 0x19d   :  { %159 = vst.msk [vmem:[#allocation2 + $0x8] sm:$0xff] %vm38_vm1, %v155_v49 }
 0x19e   :  { %235 = shalt.err (!%p232_p4)
}
 0x19f   :  { %s249_s4 = smov 128   ;;  %s250_s14 = smov 8  }
 0x1a0   :  { %171 = dma.vmem_to_hbm [thread:$0]  %s166_s13, 256, %s364_s5, [#allocation3], %s249_s4, %s249_s4, %s250_s14  }
 0x1a1   :  { %244 = dma.done.wait [#allocation3], 256  }
 0x1a2   :  { %245 = vsyncadd [#allocation3], 4294967040 }
 0x1a3   :  { %175 = vsyncpa [#allocation3], 1 }

</bundles_post_ra>
